<compile_context>
chip_gen: v5e
topology: v5e:2x2
jax: 0.10.0
libtpu: 0.0.40
codegen_flags: <defaults>
</compile_context>

<pallas_src>
import functools

import jax
import jax.numpy as jnp
import numpy as np
from jax.experimental import pallas as pl
from jax.experimental.pallas import tpu as pltpu


def _e1jmj_decode_kernel(x_ref, w_ref, o_ref, *, manrange: float, exp_marker: float):
    """Decode 128 samples per VMEM row.

    Semantics (exp == 1, as hard-coded in the PyTorch module):
      bit_j   = 1 iff sign(x_j) >= 0   (x == 0 counts as set, matching torch)
      e       = bit_0
      last    = index of last set mantissa bit (bits 1..D-1, 0-based)
      man     = 0                      if no mantissa bit set
              = last                   if e even
              = manrange - last - 1    if e odd
      out     = e * manrange + man     (float32)
    """
    # Compare in the native dtype (no wrapper astype); bits become exact 0/1.
    b = (x_ref[...] >= 0.0).astype(jnp.bfloat16)                 # (tb, 128*D)

    # Single MXU matmul: per output lane s, vc = e_s * exp_marker + sum_j b_{s,j} 2^(j-1).
    # Exact: all weights are powers of two, bits are 0/1, f32 accumulation, total < 2^24.
    vc = jnp.dot(b, w_ref[...], preferred_element_type=jnp.float32)   # (tb, 128)

    e = vc >= exp_marker                                          # bool exponent bit
    v = vc - jnp.where(e, exp_marker, 0.0)                        # exact mantissa integer
    has_man = v > 0.0

    # floor(log2(v)) via the float32 exponent field (exact for integer v >= 1).
    last = ((pltpu.bitcast(v, jnp.int32) >> 23) - 127).astype(jnp.float32)

    man = jnp.where(has_man, jnp.where(e, (manrange - 1.0) - last, last), 0.0)
    o_ref[...] = (jnp.where(e, manrange, 0.0) + man).astype(o_ref.dtype)


def _build_weights(d: int) -> jax.Array:
    """Constant (128*d, 128) bit-weight matrix: column s decodes sample s of a row."""
    w_row = np.zeros((d,), dtype=np.float32)
    w_row[0] = 2.0 ** (d - 1)                   # exponent-bit marker (> max mantissa sum)
    if d > 1:
        w_row[1:] = 2.0 ** np.arange(d - 1)     # mantissa bit j -> 2^(j-1)
    w = np.zeros((128 * d, 128), dtype=np.float32)
    for s in range(128):
        w[s * d:(s + 1) * d, s] = w_row
    return jnp.asarray(w, dtype=jnp.bfloat16)   # powers of two are exact in bf16


def _pick_row_tile(m: int, max_tile: int) -> int:
    """Row tile: large (amortize ~0.35us/step), multiple of 8, >=2 grid steps when possible."""
    if m <= 8:
        return m
    half = max(8, (m // 2) // 8 * 8)
    return min(max_tile, half)


def e1jmj_reverse_transform(x: jax.Array, vrange: int, *, max_row_tile: int = 512) -> jax.Array:
    """Pallas TPU implementation of e1jmjReverseTransform.forward (exp == 1)."""
    exp = 1
    bits = vrange // 2 + 1
    manrange = bits - exp

    n, d = x.shape
    # Exact-integer encoding needs all D bit weights + marker to fit f32 integers.
    assert 2 <= d <= 24  # TODO(synk): d > 24 needs a split (two-matmul) encoding.

    m = (n + 127) // 128                       # output rows of 128 samples
    n_pad = m * 128
    if n_pad != n:
        # Only for ragged N (< one 128-sample row of slack): one-time pad so the
        # free contiguous reshape below is exact. Padded samples decode to garbage
        # and are sliced off at the end.
        x = jnp.pad(x, ((0, n_pad - n), (0, 0)), constant_values=-1.0)
    xr = x.reshape(m, 128 * d)                 # contiguous -> free; lane-dense rows

    w = _build_weights(d)
    tb = _pick_row_tile(m, max_row_tile)
    grid = pl.cdiv(m, tb)

    kernel = functools.partial(
        _e1jmj_decode_kernel,
        manrange=float(manrange),
        exp_marker=float(2 ** (d - 1)),
    )

    out = pl.pallas_call(
        kernel,
        out_shape=jax.ShapeDtypeStruct((m, 128), jnp.float32),
        grid_spec=pltpu.PrefetchScalarGridSpec(
            num_scalar_prefetch=0,
            grid=(grid,),
            in_specs=[
                pl.BlockSpec((tb, 128 * d), lambda i: (i, 0)),       # streamed samples
                pl.BlockSpec((128 * d, 128), lambda i: (0, 0)),      # resident weights
            ],
            out_specs=pl.BlockSpec((tb, 128), lambda i: (i, 0)),     # lane-dense output
        ),
        compiler_params=pltpu.CompilerParams(
            dimension_semantics=("parallel",),
            vmem_limit_bytes=32 * 1024 * 1024,
        ),
    )(xr, w)
    return out.reshape(-1)[:n]


def _numpy_reference(x: np.ndarray, vrange: int) -> np.ndarray:
    """Direct port of the PyTorch loop, for correctness checking."""
    exp = 1
    bits = vrange // 2 + 1
    xb = (np.sign(x) + 1) / 2
    n, _ = xb.shape
    a = np.zeros([n], dtype=np.float32)
    for i in range(n):
        e_bits = xb[i, 0:exp]
        if np.sum(e_bits) == 0:
            e = 0
        else:
            nzi = np.nonzero(e_bits)[0]
            e = exp // 2 - nzi[-1] + exp // 2 - nzi[0] + 1
        man_bits = xb[i, exp:]
        manrange = bits - exp
        if e % 2 == 0:
            man = 0 if np.sum(man_bits) == 0 else np.nonzero(man_bits)[0][-1]
        else:
            man = 0 if np.sum(man_bits) == 0 else manrange - np.nonzero(man_bits)[0][-1] - 1
        a[i] = e * (bits - exp) + man
    return a


if __name__ == "__main__":
    vrange = 30                      # -> bits = 16
    bits = vrange // 2 + 1
    N, D = 2048, bits                # small: 2048 x 16 f32 (128 KiB); 2 grid steps

    key = jax.random.PRNGKey(0)
    x = jax.random.normal(key, (N, D), dtype=jnp.float32)
    # edge cases: no mantissa bit set, nothing set at all, exact zeros (count as set)
    x = x.at[0, 1:].set(-jnp.abs(x[0, 1:]) - 0.1)
    x = x.at[1, :].set(-jnp.abs(x[1, :]) - 0.1)
    x = x.at[2, 0].set(0.0)
    x = x.at[3, 5].set(0.0)

    out = e1jmj_reverse_transform(x, vrange)
    out = jax.block_until_ready(out)

    ref = _numpy_reference(np.asarray(x), vrange)
    np.testing.assert_allclose(np.asarray(out), ref, rtol=0, atol=0)

    print("KERNEL_OK")
</pallas_src>

<mosaic_0001>
module attributes {stable_mosaic.version = 11 : i64} {
  func.func @_e1jmj_decode_kernel(%arg0: i32, %arg1: memref<8x2048xf32, #tpu.memory_space<vmem>>, %arg2: memref<2048x128xbf16, #tpu.memory_space<vmem>>, %arg3: memref<8x128xf32, #tpu.memory_space<vmem>>) attributes {dimension_semantics = [#tpu.dimension_semantics<parallel>], iteration_bounds = array<i64: 2>, scalar_prefetch = 0 : i64, scratch_operands = 0 : i64, tpu.core_type = #tpu.core_type<tc>, window_params = [{transform_indices = @transform_0, window_bounds = array<i64: 8, 2048>}, {pipeline_mode = #tpu.pipeline_mode<synchronous>, transform_indices = @transform_1, window_bounds = array<i64: 2048, 128>}, {transform_indices = @transform_2, window_bounds = array<i64: 8, 128>}]} {
    %c0 = arith.constant 0 : index
    %c0_0 = arith.constant 0 : index
    %0 = vector.load %arg1[%c0, %c0_0] : memref<8x2048xf32, #tpu.memory_space<vmem>>, vector<8x2048xf32>
    %cst = arith.constant 0.000000e+00 : f32
    %1 = vector.broadcast %cst : f32 to vector<8x2048xf32>
    %2 = arith.cmpf oge, %0, %1 : vector<8x2048xf32>
    %3 = arith.extui %2 : vector<8x2048xi1> to vector<8x2048xi32>
    %4 = arith.sitofp %3 : vector<8x2048xi32> to vector<8x2048xf32>
    %5 = arith.truncf %4 : vector<8x2048xf32> to vector<8x2048xbf16>
    %c0_1 = arith.constant 0 : index
    %c0_2 = arith.constant 0 : index
    %6 = vector.load %arg2[%c0_1, %c0_2] : memref<2048x128xbf16, #tpu.memory_space<vmem>>, vector<2048x128xbf16>
    %cst_3 = arith.constant dense<0.000000e+00> : vector<8x128xf32>
    %7 = tpu.matmul %5, %6, %cst_3 {dimension_numbers = #tpu.dot_dimension_numbers<[1], [0], [0], [1], [0, 0, 1, 1], [], []>} : vector<8x2048xbf16>, vector<2048x128xbf16>, vector<8x128xf32> -> vector<8x128xf32>
    %cst_4 = arith.constant 3.276800e+04 : f32
    %8 = vector.broadcast %cst_4 : f32 to vector<8x128xf32>
    %9 = arith.cmpf oge, %7, %8 : vector<8x128xf32>
    %cst_5 = arith.constant 3.276800e+04 : f32
    %cst_6 = arith.constant 0.000000e+00 : f32
    %10 = vector.broadcast %cst_5 : f32 to vector<8x128xf32>
    %11 = vector.broadcast %cst_6 : f32 to vector<8x128xf32>
    %12 = arith.select %9, %10, %11 : vector<8x128xi1>, vector<8x128xf32>
    %13 = arith.subf %7, %12 : vector<8x128xf32>
    %cst_7 = arith.constant 0.000000e+00 : f32
    %14 = vector.broadcast %cst_7 : f32 to vector<8x128xf32>
    %15 = arith.cmpf ogt, %13, %14 : vector<8x128xf32>
    %16 = tpu.bitcast %13 : vector<8x128xf32> -> vector<8x128xi32>
    %c23_i32 = arith.constant 23 : i32
    %17 = vector.broadcast %c23_i32 : i32 to vector<8x128xi32>
    %18 = arith.shrsi %16, %17 : vector<8x128xi32>
    %c127_i32 = arith.constant 127 : i32
    %19 = vector.broadcast %c127_i32 : i32 to vector<8x128xi32>
    %20 = arith.subi %18, %19 : vector<8x128xi32>
    %21 = arith.sitofp %20 : vector<8x128xi32> to vector<8x128xf32>
    %cst_8 = arith.constant 1.400000e+01 : f32
    %22 = vector.broadcast %cst_8 : f32 to vector<8x128xf32>
    %23 = arith.subf %22, %21 : vector<8x128xf32>
    %24 = arith.select %9, %23, %21 : vector<8x128xi1>, vector<8x128xf32>
    %cst_9 = arith.constant 0.000000e+00 : f32
    %25 = vector.broadcast %cst_9 : f32 to vector<8x128xf32>
    %26 = arith.select %15, %24, %25 : vector<8x128xi1>, vector<8x128xf32>
    %cst_10 = arith.constant 1.500000e+01 : f32
    %cst_11 = arith.constant 0.000000e+00 : f32
    %27 = vector.broadcast %cst_10 : f32 to vector<8x128xf32>
    %28 = vector.broadcast %cst_11 : f32 to vector<8x128xf32>
    %29 = arith.select %9, %27, %28 : vector<8x128xi1>, vector<8x128xf32>
    %30 = arith.addf %29, %26 : vector<8x128xf32>
    %c0_12 = arith.constant 0 : index
    %c0_13 = arith.constant 0 : index
    %31 = vector.load %arg3[%c0_12, %c0_13] : memref<8x128xf32, #tpu.memory_space<vmem>>, vector<8x128xf32>
    tpu.vector_store %arg3[%c0_12, %c0_13], %30 {strides = array<i32>} : memref<8x128xf32, #tpu.memory_space<vmem>>, vector<8x128xf32>,
    return
  }
  func.func @transform_0(%arg0: i32) -> (i32, i32) {
    %c0_i32 = arith.constant 0 : i32
    %c0_i32_0 = arith.constant 0 : i32
    return %arg0, %c0_i32 : i32, i32
  }
  func.func @transform_1(%arg0: i32) -> (i32, i32) {
    %c0_i32 = arith.constant 0 : i32
    %c0_i32_0 = arith.constant 0 : i32
    %c0_i32_1 = arith.constant 0 : i32
    return %c0_i32, %c0_i32_0 : i32, i32
  }
  func.func @transform_2(%arg0: i32) -> (i32, i32) {
    %c0_i32 = arith.constant 0 : i32
    %c0_i32_0 = arith.constant 0 : i32
    return %arg0, %c0_i32 : i32, i32
  }
}

</mosaic_0001>

<bundles_post_ra>
// kernel: tpu_custom_call.1
= control target key start
LH: loop header
LB: loop body
LE: loop exit
PB: predicated region body
PF: predicated region fallthrough
CT: control target
= control target key end

     0   :  { %7 = vsyncpa [#allocation3], 0  ;;  %s2711_s0 = inlined_call_operand.hbm [shape: f32[16,2048], index: 0, kind: input, shape index: {}]   ;;  %s2712_s1 = inlined_call_operand.hbm [shape: bf16[2048,128], index: 1, kind: input, shape index: {}]   ;;  %s2713_s2 = inlined_call_operand.hbm [shape: f32[16,128], index: 2, kind: output, shape index: {}]  }
   0x1   :  { %9 = vsyncpa [#allocation3 + $0x1], 0 }
   0x2   :  { %10 = vsyncpa [#allocation6], 0 }
   0x3   :  { %11 = vsyncpa [#allocation4], 0 }
   0x4   :  { %13 = vsyncpa [#allocation4 + $0x1], 0  ;;  %s2519_s9 = smov 0   ;;  %s2521_s10 = smov 0  }
   0x5   :  { %s2523_s11 = smov 0   ;;  %s2525_s12 = smov 0  }
   0x6 LB: > { %s108_s15 = sshll.u32 %s2712_s1, 4  ;;  %s2543_s16 = sadd.s32 4294967295, %s2497_s12   ;;  %s2497_s12 = sphi %s2525_s12, %s2729_s12   ;;  %s2493_s11 = sphi %s2523_s11, %s2728_s11   ;;  %s2489_s10 = sphi %s2521_s10, %s2727_s10   ;;  %s2485_s9 = sphi %s2519_s9, %s2726_s9   ;;  %s109_s15 = int_to_ptr.hbm [resolvable:$true] %s108_s15 }
   0x7   : > { %p1602_p0 = scmp.ge.s32.totalorder %s2497_s12, 1  ;;  %p40_p1 = scmp.eq.s32.totalorder %s2543_s16, 0 }
   0x8   : > { %p97_p2 = scmp.lt.s32.totalorder %s2497_s12, 3  ;;  %s2499_s18 = smov [#allocation5]  }
   0x9   : > { %s110_s19 = sshll.u32 %s2499_s18, 4  ;;  %s2500_s20 = smov 64   ;;  %s111_s19 = int_to_ptr.vmem [resolvable:$true] %s110_s19 }
   0xa   : > { %p2548_p3 = pnand %p1602_p0, %p97_p2  ;;  %s2501_s21 = smov 4  }
   0xb   : > { %s1601_s22 = sadd.s32 4294967294, %s2497_s12   ;;  %s2559_s23 = sadd.s32 1, %s2497_s12  }
   0xc   : > { %p2314_p4 = pneg %p2548_p3  ;;  %s26_s24 = sadd.s32 1, %s2493_s11 }
   0xd   : > { %s23_s25 = ssub.s32 %s2497_s12, %s2559_s23  ;;  %p33_p7 = scmp.ne.s32.totalorder %s2493_s11, %s2489_s10 }
   0xe   : > { %p2315_p6 = pnand %p2314_p4, %p40_p1  ;;  %p24_p8 = scmp.eq.s32.totalorder %s23_s25, 0 }
   0xf   : > { %p34_p9 = scmp.eq.s32.totalorder %s2497_s12, 0  ;;  %p39_p10 = scmp.ne.s32.totalorder %s2489_s10, %s2485_s9 }
  0x10   : > { %2317 = dma.hbm_to_vmem [thread:$0]  (!%p2315_p6), %s109_s15, 16384, %s111_s19, [#allocation6], %s2500_s20, %s2500_s20, %s2501_s21  }
  0x11   : > { %p84_p11 = scmp.eq.s32.totalorder %s2543_s16, 1  ;;  %p2575_p12 = por %p40_p1, %p39_p10 }
  0x12   : > { %s2571_s26 = scalar_select %p24_p8, %s2493_s11, %s26_s24  }
  0x13   : > { %p2579_p13 = por %p84_p11, %p33_p7  ;;  %p90_p0 = scmp.eq.s32.totalorder %s1601_s22, 1 }
  0x14   : > { %p35_p2 = por %p34_p9, %p33_p7  ;;  %s124_s29 = sand.u32 1, %s2493_s11  }
  0x15   : > { %p2584_p4 = por %p90_p0, %p39_p10  ;;  %p2327_p6 = scmp.lt.s32.totalorder %s2497_s12, 2 }
  0x16   : > { %s1605_s3 = sshll.u32 %s124_s29, 7  ;;  %s2177_s4 = sshll.u32 %s2497_s12, 7 }
  0x17   : > { %s133_s7 = scalar_lea.hbm %s2711_s0, %s2177_s4  ;;  %s128_s13 = scalar_lea.vmem [#allocation2], %s1605_s3 }
  0x18   : > { %s135_s8 = sshll.u32 %s133_s7, 4  ;;  %s137_s14 = sshll.u32 %s128_s13, 4  ;;  %s136_s8 = int_to_ptr.hbm [resolvable:$true] %s135_s8  ;;  %s138_s14 = int_to_ptr.vmem [resolvable:$true] %s137_s14 }
  0x19   : > { %p2593_p8 = pnand %p2327_p6, %p35_p2  ;;  %s125_s18 = scalar_lea.sflag [#allocation3], %s124_s29 }
  0x1a   : > { %s2397_s19 = sshra.s32 %s136_s8, 4  ;;  %s2404_s24 = scalar_lea.hbm %s2711_s0, 256  ;;  %s2398_s19 = int_to_ptr.hbm [resolvable:$true] %s2397_s19 }
  0x1b   : > { %s2399_s20 = scalar_lea.hbm %s2398_s19, 128  ;;  %p2401_p9 = pneg %p2593_p8 }
  0x1c   : > { %p2400_p7 = scmp.ne.s32.totalorder %s2398_s19, %s2399_s20  ;;  %p2405_p0 = scmp.lt.s32.totalorder %s2398_s19, %s2711_s0 }
  0x1d   : > { %p2406_p2 = scmp.lt.s32.totalorder %s2404_s24, %s2399_s20 }
  0x1e   : > { %p2402_p10 = pnand %p2401_p9, %p2400_p7 }
  0x1f   : > { %p2407_p6 = por %p2406_p2, %p2405_p0 }
  0x20   : > { %p2403_p11 = pneg %p2402_p10 }
  0x22   : > { %p2408_p5 = pnand %p2407_p6, %p2403_p11 }
  0x24   : > { %2411 = shalt.err (!%p2408_p5)
}
  0x25   : > { %2321 = dma.hbm_to_vmem [thread:$0]  (!%p2593_p8), %s136_s8, 2048, %s138_s14, %s125_s18  }
  0x26   : > { %146 = sbr.rel (%p2548_p3) target bundleno = 331 (0x14b), region = 28  ;;  %s2610_s29 = sand.u32 (!%p2548_p3), 1, %s2489_s10  }
  0x27   : > { %s1609_s4 = sshll.u32 (!%p2548_p3), %s2610_s29, 7  ;;  %s149_s5 = scalar_lea.sflag (!%p2548_p3), [#allocation3], %s2610_s29 }
  0x28   : > { %s2614_s6 = scalar_lea.vmem (!%p2548_p3), [#allocation2], %s1609_s4 }
  0x2b   : > { %2472 = dma.done.wait (%p2575_p12), %s149_s5, 2048  }
  0x2c   : > { %2474 = vsyncadd (%p2575_p12), %s149_s5, 4294965248 }
  0x2d   : > { %2476 = dma.done.wait (%p40_p1), [#allocation6], 16384  }
  0x2e   : > { %2478 = vsyncadd (%p40_p1), [#allocation6], 4294950912  ;;  %v2185_v0 = vld [vmem:[#allocation5 + $0x38] sm:$0xff]  ;;  %v2184_v4 = vld [vmem:[#allocation5 + $0x30] sm:$0xff]  ;;  %v2502_v45 = vmov 1.0|1.0  }
  0x2f   : > { %v2193_v1 = vld [vmem:[#allocation5 + $0x78] sm:$0xff]  ;;  %1283 = vmatpush.bf16.msra.mxu0 %v2185_v0  ;;  %v2192_v5 = vld [vmem:[#allocation5 + $0x70] sm:$0xff]  ;;  %v2183_v8 = vld [vmem:[#allocation5 + $0x28] sm:$0xff]  ;;  %s1611_s17 = sshll.u32 %s2610_s29, 3  ;;  %s2174_s27 = sshll.u32 %s2543_s16, 3 }
  0x30   : > { %v2201_v2 = vld [vmem:[#allocation5 + $0xb8] sm:$0xff]  ;;  %1296 = vmatpush.bf16.msra.mxu1 %v2193_v1  ;;  %v2200_v6 = vld [vmem:[#allocation5 + $0xb0] sm:$0xff]  ;;  %v2191_v9 = vld [vmem:[#allocation5 + $0x68] sm:$0xff]  ;;  %s1516_s13 = scalar_lea.hbm %s2713_s2, %s2174_s27  ;;  %s178_s14 = scalar_lea.vmem [#allocation7], %s1611_s17 }
  0x31   : > { %v2209_v3 = vld [vmem:[#allocation5 + $0xf8] sm:$0xff]  ;;  %1309 = vmatpush.bf16.msra.mxu2 %v2201_v2  ;;  %v2208_v7 = vld [vmem:[#allocation5 + $0xf0] sm:$0xff]  ;;  %v2199_v10 = vld [vmem:[#allocation5 + $0xa8] sm:$0xff]  ;;  %s1518_s15 = sshll.u32 %s178_s14, 4  ;;  %s1520_s18 = sshll.u32 %s1516_s13, 4  ;;  %s1519_s15 = int_to_ptr.vmem [resolvable:$true] %s1518_s15  ;;  %s1521_s18 = int_to_ptr.hbm [resolvable:$true] %s1520_s18 }
  0x32   : > { %1322 = vmatpush.bf16.msra.mxu3 %v2209_v3  ;;  %v2207_v11 = vld [vmem:[#allocation5 + $0xe8] sm:$0xff]  ;;  %v2182_v12 = vld [vmem:[#allocation5 + $0x20] sm:$0xff]  ;;  %v2181_v16 = vld [vmem:[#allocation5 + $0x18] sm:$0xff]  ;;  %s1506_s16 = scalar_lea.sflag [#allocation4], %s2610_s29  ;;  %s2441_s19 = sshra.s32 %s1521_s18, 4  ;;  %s2442_s19 = int_to_ptr.hbm [resolvable:$true] %s2441_s19 }
  0x33   : > { %1284 = vmatpush.bf16.msra.mxu0 %v2184_v4  ;;  %v2190_v13 = vld [vmem:[#allocation5 + $0x60] sm:$0xff]  ;;  %v2189_v17 = vld [vmem:[#allocation5 + $0x58] sm:$0xff]  ;;  %v2180_v20 = vld [vmem:[#allocation5 + $0x10] sm:$0xff]  ;;  %s2443_s20 = scalar_lea.hbm %s2442_s19, 8  ;;  %s2447_s24 = scalar_lea.hbm %s2713_s2, 16 }
  0x34   : > { %1297 = vmatpush.bf16.msra.mxu1 %v2192_v5  ;;  %v2198_v14 = vld [vmem:[#allocation5 + $0xa0] sm:$0xff]  ;;  %v2197_v18 = vld [vmem:[#allocation5 + $0x98] sm:$0xff]  ;;  %v2188_v21 = vld [vmem:[#allocation5 + $0x50] sm:$0xff]  ;;  %p2444_p1 = scmp.ne.s32.totalorder %s2442_s19, %s2443_s20  ;;  %p2448_p12 = scmp.lt.s32.totalorder %s2442_s19, %s2713_s2 }
  0x35   : > { %1310 = vmatpush.bf16.msra.mxu2 %v2200_v6  ;;  %v2206_v15 = vld [vmem:[#allocation5 + $0xe0] sm:$0xff]  ;;  %v2205_v19 = vld [vmem:[#allocation5 + $0xd8] sm:$0xff]  ;;  %v2196_v22 = vld [vmem:[#allocation5 + $0x90] sm:$0xff]  ;;  %p2449_p8 = scmp.lt.s32.totalorder %s2447_s24, %s2443_s20 }
  0x36   : > { %1323 = vmatpush.bf16.msra.mxu3 %v2208_v7  ;;  %v2204_v23 = vld [vmem:[#allocation5 + $0xd0] sm:$0xff]  ;;  %v2179_v24 = vld [vmem:[#allocation5 + $0x8] sm:$0xff]  ;;  %v179_v29 = vld [vmem:[%s2614_s6] sm:$0xff]  ;;  %p2445_p3 = pnand %p2444_p1, %p2579_p13 }
  0x37   : > { %1285 = vmatpush.bf16.msra.mxu0 %v2183_v8  ;;  %v2187_v25 = vld [vmem:[#allocation5 + $0x48] sm:$0xff]  ;;  %v181_v28 = vld [vmem:[%s2614_s6 + $0x10] sm:$0xff]  ;;  %v182_v30 = vld [vmem:[%s2614_s6 + $0x18] sm:$0xff]  ;;  %vm195_vm1 = vcmp.ge.f32.partialorder %v179_v29, 0.0  ;;  %p2450_p7 = por %p2449_p8, %p2448_p12 }
  0x38   : > { %1298 = vmatpush.bf16.msra.mxu1 %v2191_v9  ;;  %v2195_v26 = vld [vmem:[#allocation5 + $0x88] sm:$0xff]  ;;  %v2178_v31 = vld [vmem:[#allocation5] sm:$0xff]  ;;  %vm197_vm0 = vcmp.ge.f32.partialorder %v181_v28, 0.0  ;;  %v2217_v36 = vld [vmem:[#allocation5 + $0x138] sm:$0xff]  ;;  %vm198_vm2 = vcmp.ge.f32.partialorder %v182_v30, 0.0  ;;  %p2446_p5 = pneg %p2445_p3 }
  0x39   : > { %1311 = vmatpush.bf16.msra.mxu2 %v2199_v10  ;;  %v2203_v27 = vld [vmem:[#allocation5 + $0xc8] sm:$0xff]  ;;  %v2186_v32 = vld [vmem:[#allocation5 + $0x40] sm:$0xff]  ;;  %v2225_v37 = vld [vmem:[#allocation5 + $0x178] sm:$0xff] }
  0x3a   : > { %1324 = vmatpush.bf16.msra.mxu3 %v2207_v11  ;;  %v180_v33 = vld [vmem:[%s2614_s6 + $0x8] sm:$0xff]  ;;  %v2194_v34 = vld [vmem:[#allocation5 + $0x80] sm:$0xff]  ;;  %v2233_v38 = vld [vmem:[#allocation5 + $0x1b8] sm:$0xff]  ;;  %p2451_p9 = pnand %p2450_p7, %p2446_p5 }
  0x3b   : > { %1286 = vmatpush.bf16.msra.mxu0 %v2182_v12  ;;  %v2202_v35 = vld [vmem:[#allocation5 + $0xc0] sm:$0xff]  ;;  %v2241_v39 = vld [vmem:[#allocation5 + $0x1f8] sm:$0xff]  ;;  %vm2628_vm3 = vmpackc.low %vm197_vm0, %vm197_vm0  ;;  %vm196_vm4 = vcmp.ge.f32.partialorder %v180_v33, 0.0 }
  0x3c   : > { %1299 = vmatpush.bf16.msra.mxu1 %v2190_v13  ;;  %vm2140_vm5 = vmpackc.low %vm195_vm1, %vm195_vm1  ;;  %v2216_v41 = vld [vmem:[#allocation5 + $0x130] sm:$0xff]  ;;  %v2215_v46 = vld [vmem:[#allocation5 + $0x128] sm:$0xff] }
  0x3d   : > { %1312 = vmatpush.bf16.msra.mxu2 %v2198_v14  ;;  %vm2146_vm6 = vmpackc.low %vm198_vm2, %vm198_vm2  ;;  %v2224_v42 = vld [vmem:[#allocation5 + $0x170] sm:$0xff]  ;;  %v2223_v47 = vld [vmem:[#allocation5 + $0x168] sm:$0xff] }
  0x3e   : > { %1325 = vmatpush.bf16.msra.mxu3 %v2206_v15  ;;  %vm2142_vm7 = vmpackc.low %vm196_vm4, %vm196_vm4  ;;  %v2232_v43 = vld [vmem:[#allocation5 + $0x1b0] sm:$0xff]  ;;  %v2231_v48 = vld [vmem:[#allocation5 + $0x1a8] sm:$0xff] }
  0x3f   : > { %1287 = vmatpush.bf16.msra.mxu0 %v2181_v16  ;;  %v2240_v44 = vld [vmem:[#allocation5 + $0x1f0] sm:$0xff]  ;;  %v2239_v49 = vld [vmem:[#allocation5 + $0x1e8] sm:$0xff]  ;;  %v2214_v50 = vld [vmem:[#allocation5 + $0x120] sm:$0xff] }
  0x40   : > { %1300 = vmatpush.bf16.msra.mxu1 %v2189_v17  ;;  %v2222_v51 = vld [vmem:[#allocation5 + $0x160] sm:$0xff]  ;;  %v2213_v54 = vld [vmem:[#allocation5 + $0x118] sm:$0xff]  ;;  %v2212_v58 = vld [vmem:[#allocation5 + $0x110] sm:$0xff] }
  0x41   : > { %1313 = vmatpush.bf16.msra.mxu2 %v2197_v18  ;;  %v2230_v52 = vld [vmem:[#allocation5 + $0x1a0] sm:$0xff]  ;;  %v2221_v55 = vld [vmem:[#allocation5 + $0x158] sm:$0xff]  ;;  %v2220_v59 = vld [vmem:[#allocation5 + $0x150] sm:$0xff] }
  0x42   : > { %1326 = vmatpush.bf16.msra.mxu3 %v2205_v19  ;;  %v2238_v53 = vld [vmem:[#allocation5 + $0x1e0] sm:$0xff]  ;;  %v2229_v56 = vld [vmem:[#allocation5 + $0x198] sm:$0xff]  ;;  %v2228_v60 = vld [vmem:[#allocation5 + $0x190] sm:$0xff] }
  0x43   : > { %1288 = vmatpush.bf16.msra.mxu0 %v2180_v20  ;;  %v2237_v57 = vld [vmem:[#allocation5 + $0x1d8] sm:$0xff]  ;;  %v2236_v61 = vld [vmem:[#allocation5 + $0x1d0] sm:$0xff]  ;;  %v2211_v62 = vld [vmem:[#allocation5 + $0x108] sm:$0xff] }
  0x44   : > { %1301 = vmatpush.bf16.msra.mxu1 %v2188_v21  ;;  %v2219_v63 = vld [vmem:[#allocation5 + $0x148] sm:$0xff]  ;;  %v185_v2 = vld [vmem:[%s2614_s6 + $0x30] sm:$0xff]  ;;  %v183_v3 = vld [vmem:[%s2614_s6 + $0x20] sm:$0xff] }
  0x45   : > { %1314 = vmatpush.bf16.msra.mxu2 %v2196_v22  ;;  %v2227_v0 = vld [vmem:[#allocation5 + $0x188] sm:$0xff]  ;;  %v186_v4 = vld [vmem:[%s2614_s6 + $0x38] sm:$0xff]  ;;  %v2210_v5 = vld [vmem:[#allocation5 + $0x100] sm:$0xff]  ;;  %vm201_vm8 = vcmp.ge.f32.partialorder %v185_v2, 0.0  ;;  %vm199_vm9 = vcmp.ge.f32.partialorder %v183_v3, 0.0 }
  0x46   : > { %1327 = vmatpush.bf16.msra.mxu3 %v2204_v23  ;;  %v2235_v1 = vld [vmem:[#allocation5 + $0x1c8] sm:$0xff]  ;;  %v2218_v6 = vld [vmem:[#allocation5 + $0x140] sm:$0xff]  ;;  %v2249_v10 = vld [vmem:[#allocation5 + $0x238] sm:$0xff]  ;;  %vm202_vm10 = vcmp.ge.f32.partialorder %v186_v4, 0.0 }
  0x47   : > { %1289 = vmatpush.bf16.msra.mxu0 %v2179_v24  ;;  %v184_v7 = vld [vmem:[%s2614_s6 + $0x28] sm:$0xff]  ;;  %v2226_v8 = vld [vmem:[#allocation5 + $0x180] sm:$0xff]  ;;  %v2257_v11 = vld [vmem:[#allocation5 + $0x278] sm:$0xff] }
  0x48   : > { %1302 = vmatpush.bf16.msra.mxu1 %v2187_v25  ;;  %v2234_v9 = vld [vmem:[#allocation5 + $0x1c0] sm:$0xff]  ;;  %v2265_v12 = vld [vmem:[#allocation5 + $0x2b8] sm:$0xff]  ;;  %vm2642_vm11 = vmpackc.low %vm201_vm8, %vm201_vm8  ;;  %vm200_vm12 = vcmp.ge.f32.partialorder %v184_v7, 0.0 }
  0x49   : > { %1315 = vmatpush.bf16.msra.mxu2 %v2195_v26  ;;  %v2273_v13 = vld [vmem:[#allocation5 + $0x2f8] sm:$0xff]  ;;  %vm2148_vm13 = vmpackc.low %vm199_vm9, %vm199_vm9  ;;  %v2248_v15 = vld [vmem:[#allocation5 + $0x230] sm:$0xff] }
  0x4a   : > { %1328 = vmatpush.bf16.msra.mxu3 %v2203_v27  ;;  %vm2154_vm14 = vmpackc.low %vm202_vm10, %vm202_vm10  ;;  %v2256_v16 = vld [vmem:[#allocation5 + $0x270] sm:$0xff]  ;;  %v2247_v19 = vld [vmem:[#allocation5 + $0x228] sm:$0xff] }
  0x4b   : > { %1290 = vmatpush.bf16.msra.mxu0 %v2178_v31  ;;  %vm2150_vm15 = vmpackc.low %vm200_vm12, %vm200_vm12  ;;  %v2264_v17 = vld [vmem:[#allocation5 + $0x2b0] sm:$0xff]  ;;  %v2255_v20 = vld [vmem:[#allocation5 + $0x268] sm:$0xff] }
  0x4c   : > { %1303 = vmatpush.bf16.msra.mxu1 %v2186_v32  ;;  %v2272_v18 = vld [vmem:[#allocation5 + $0x2f0] sm:$0xff]  ;;  %v2263_v21 = vld [vmem:[#allocation5 + $0x2a8] sm:$0xff]  ;;  %v2246_v23 = vld [vmem:[#allocation5 + $0x220] sm:$0xff] }
  0x4d   : > { %1316 = vmatpush.bf16.msra.mxu2 %v2194_v34  ;;  %v2271_v22 = vld [vmem:[#allocation5 + $0x2e8] sm:$0xff]  ;;  %v2254_v24 = vld [vmem:[#allocation5 + $0x260] sm:$0xff]  ;;  %v2245_v27 = vld [vmem:[#allocation5 + $0x218] sm:$0xff] }
  0x4e   : > { %1329 = vmatpush.bf16.msra.mxu3 %v2202_v35  ;;  %2141 = vmatmul.msk.bf16.vlgmr.msra.gmra.mxu0 %vm2140_vm5, %v2502_v45  ;;  %v2262_v25 = vld [vmem:[#allocation5 + $0x2a0] sm:$0xff]  ;;  %v2253_v28 = vld [vmem:[#allocation5 + $0x258] sm:$0xff]  ;;  %v2244_v31 = vld [vmem:[#allocation5 + $0x210] sm:$0xff] }
  0x4f   : > { %1335 = vmatpush.bf16.msrb.mxu0 %v2217_v36  ;;  %2143 = vmatmul.msk.bf16.vlgmr.msra.gmra.mxu1 %vm2142_vm7, %v2502_v45  ;;  %v2270_v26 = vld [vmem:[#allocation5 + $0x2e0] sm:$0xff]  ;;  %v2261_v29 = vld [vmem:[#allocation5 + $0x298] sm:$0xff]  ;;  %v2252_v32 = vld [vmem:[#allocation5 + $0x250] sm:$0xff] }
  0x50   : > { %1348 = vmatpush.bf16.msrb.mxu1 %v2225_v37  ;;  %2145 = vmatmul.msk.bf16.vlgmr.msra.gmra.mxu2 %vm2628_vm3, %v2502_v45  ;;  %v2269_v30 = vld [vmem:[#allocation5 + $0x2d8] sm:$0xff]  ;;  %v2260_v33 = vld [vmem:[#allocation5 + $0x290] sm:$0xff]  ;;  %v2243_v35 = vld [vmem:[#allocation5 + $0x208] sm:$0xff] }
  0x51   : > { %1361 = vmatpush.bf16.msrb.mxu2 %v2233_v38  ;;  %2147 = vmatmul.msk.bf16.vlgmr.msra.gmra.mxu3 %vm2146_vm6, %v2502_v45  ;;  %v2268_v34 = vld [vmem:[#allocation5 + $0x2d0] sm:$0xff]  ;;  %v2251_v36 = vld [vmem:[#allocation5 + $0x248] sm:$0xff]  ;;  %v2285_v2 = vld [vmem:[#allocation5 + $0x358] sm:$0xff] }
  0x52   : > { %1374 = vmatpush.bf16.msrb.mxu3 %v2241_v39  ;;  %v2259_v37 = vld [vmem:[#allocation5 + $0x288] sm:$0xff]  ;;  %v187_v39 = vld [vmem:[%s2614_s6 + $0x40] sm:$0xff]  ;;  %v189_v40 = vld [vmem:[%s2614_s6 + $0x50] sm:$0xff] }
  0x53   : > { %1336 = vmatpush.bf16.msrb.mxu0 %v2216_v41  ;;  %v2267_v38 = vld [vmem:[#allocation5 + $0x2c8] sm:$0xff]  ;;  %vm203_vm0 = vcmp.ge.f32.partialorder %v187_v39, 0.0  ;;  %vm205_vm1 = vcmp.ge.f32.partialorder %v189_v40, 0.0  ;;  %v2293_v3 = vld [vmem:[#allocation5 + $0x398] sm:$0xff]  ;;  %v2292_v7 = vld [vmem:[#allocation5 + $0x390] sm:$0xff] }
  0x54   : > { %1349 = vmatpush.bf16.msrb.mxu1 %v2224_v42  ;;  %v188_v41 = vld [vmem:[%s2614_s6 + $0x48] sm:$0xff]  ;;  %v2242_v42 = vld [vmem:[#allocation5 + $0x200] sm:$0xff]  ;;  %vm2656_vm3 = vmpackc.low %vm203_vm0, %vm203_vm0 }
  0x55   : > { %1362 = vmatpush.bf16.msrb.mxu2 %v2232_v43  ;;  %v2250_v43 = vld [vmem:[#allocation5 + $0x240] sm:$0xff]  ;;  %vm204_vm2 = vcmp.ge.f32.partialorder %v188_v41, 0.0  ;;  %vm2160_vm5 = vmpackc.low %vm205_vm1, %vm205_vm1  ;;  %v2301_v4 = vld [vmem:[#allocation5 + $0x3d8] sm:$0xff] }
  0x56   : > { %1375 = vmatpush.bf16.msrb.mxu3 %v2240_v44  ;;  %v190_v44 = vld [vmem:[%s2614_s6 + $0x58] sm:$0xff]  ;;  %vm2158_vm6 = vmpackc.low %vm204_vm2, %vm204_vm2  ;;  %v192_v14 = vld [vmem:[%s2614_s6 + $0x68] sm:$0xff] }
  0x57   : > { %1337 = vmatpush.bf16.msrb.mxu0 %v2215_v46  ;;  %v2258_v46 = vld [vmem:[#allocation5 + $0x280] sm:$0xff]  ;;  %vm206_vm4 = vcmp.ge.f32.partialorder %v190_v44, 0.0  ;;  %vm208_vm9 = vcmp.ge.f32.partialorder %v192_v14, 0.0 }
  0x58   : > { %1350 = vmatpush.bf16.msrb.mxu1 %v2223_v47  ;;  %v2266_v47 = vld [vmem:[#allocation5 + $0x2c0] sm:$0xff]  ;;  %vm2162_vm7 = vmpackc.low %vm206_vm4, %vm206_vm4 }
  0x59   : > { %1363 = vmatpush.bf16.msrb.mxu2 %v2231_v48  ;;  %v2281_v48 = vld [vmem:[#allocation5 + $0x338] sm:$0xff] }
  0x5a   : > { %1376 = vmatpush.bf16.msrb.mxu3 %v2239_v49  ;;  %v2289_v49 = vld [vmem:[#allocation5 + $0x378] sm:$0xff] }
  0x5b   : > { %1338 = vmatpush.bf16.msrb.mxu0 %v2214_v50  ;;  %v2297_v50 = vld [vmem:[#allocation5 + $0x3b8] sm:$0xff] }
  0x5c   : > { %1351 = vmatpush.bf16.msrb.mxu1 %v2222_v51  ;;  %v2305_v51 = vld [vmem:[#allocation5 + $0x3f8] sm:$0xff] }
  0x5d   : > { %1364 = vmatpush.bf16.msrb.mxu2 %v2230_v52 }
  0x5e   : > { %1377 = vmatpush.bf16.msrb.mxu3 %v2238_v53  ;;  %v2280_v53 = vld [vmem:[#allocation5 + $0x330] sm:$0xff] }
  0x5f   : > { %1339 = vmatpush.bf16.msrb.mxu0 %v2213_v54  ;;  %v2288_v54 = vld [vmem:[#allocation5 + $0x370] sm:$0xff] }
  0x60   : > { %1352 = vmatpush.bf16.msrb.mxu1 %v2221_v55  ;;  %v2296_v55 = vld [vmem:[#allocation5 + $0x3b0] sm:$0xff] }
  0x61   : > { %1365 = vmatpush.bf16.msrb.mxu2 %v2229_v56  ;;  %v2304_v56 = vld [vmem:[#allocation5 + $0x3f0] sm:$0xff] }
  0x62   : > { %1378 = vmatpush.bf16.msrb.mxu3 %v2237_v57  ;;  %v2279_v57 = vld [vmem:[#allocation5 + $0x328] sm:$0xff] }
  0x63   : > { %1340 = vmatpush.bf16.msrb.mxu0 %v2212_v58  ;;  %v2287_v58 = vld [vmem:[#allocation5 + $0x368] sm:$0xff] }
  0x64   : > { %1353 = vmatpush.bf16.msrb.mxu1 %v2220_v59  ;;  %v2295_v59 = vld [vmem:[#allocation5 + $0x3a8] sm:$0xff] }
  0x65   : > { %1366 = vmatpush.bf16.msrb.mxu2 %v2228_v60  ;;  %v2303_v60 = vld [vmem:[#allocation5 + $0x3e8] sm:$0xff] }
  0x66   : > { %1379 = vmatpush.bf16.msrb.mxu3 %v2236_v61  ;;  %v2278_v61 = vld [vmem:[#allocation5 + $0x320] sm:$0xff] }
  0x67   : > { %1341 = vmatpush.bf16.msrb.mxu0 %v2211_v62  ;;  %v2286_v62 = vld [vmem:[#allocation5 + $0x360] sm:$0xff] }
  0x68   : > { %1354 = vmatpush.bf16.msrb.mxu1 %v2219_v63  ;;  %v2294_v63 = vld [vmem:[#allocation5 + $0x3a0] sm:$0xff] }
  0x69   : > { %1367 = vmatpush.bf16.msrb.mxu2 %v2227_v0  ;;  %v2302_v0 = vld [vmem:[#allocation5 + $0x3e0] sm:$0xff] }
  0x6a   : > { %1380 = vmatpush.bf16.msrb.mxu3 %v2235_v1  ;;  %v2277_v1 = vld [vmem:[#allocation5 + $0x318] sm:$0xff] }
  0x6b   : > { %1342 = vmatpush.bf16.msrb.mxu0 %v2210_v5  ;;  %v2276_v5 = vld [vmem:[#allocation5 + $0x310] sm:$0xff] }
  0x6c   : > { %1355 = vmatpush.bf16.msrb.mxu1 %v2218_v6  ;;  %v2284_v6 = vld [vmem:[#allocation5 + $0x350] sm:$0xff] }
  0x6d   : > { %1368 = vmatpush.bf16.msrb.mxu2 %v2226_v8  ;;  %v2300_v8 = vld [vmem:[#allocation5 + $0x3d0] sm:$0xff] }
  0x6e   : > { %1381 = vmatpush.bf16.msrb.mxu3 %v2234_v9  ;;  %2149 = vmatmul.msk.bf16.vlgmr.msrb.gmra.mxu0 %vm2148_vm13, %v2502_v45  ;;  %v2275_v9 = vld [vmem:[#allocation5 + $0x308] sm:$0xff]  ;;  %vm2166_vm13 = vmpackc.low %vm208_vm9, %vm208_vm9 }
  0x6f   : > { %1387 = vmatpush.bf16.msra.mxu0 %v2249_v10  ;;  %2151 = vmatmul.msk.bf16.vlgmr.msrb.gmra.mxu1 %vm2150_vm15, %v2502_v45  ;;  %v2283_v10 = vld [vmem:[#allocation5 + $0x348] sm:$0xff] }
  0x70   : > { %1400 = vmatpush.bf16.msra.mxu1 %v2257_v11  ;;  %2153 = vmatmul.msk.bf16.vlgmr.msrb.gmra.mxu2 %vm2642_vm11, %v2502_v45  ;;  %v191_v11 = vld [vmem:[%s2614_s6 + $0x60] sm:$0xff] }
  0x71   : > { %1413 = vmatpush.bf16.msra.mxu2 %v2265_v12  ;;  %2155 = vmatmul.msk.bf16.vlgmr.msrb.gmra.mxu3 %vm2154_vm14, %v2502_v45  ;;  %v2291_v12 = vld [vmem:[#allocation5 + $0x388] sm:$0xff]  ;;  %vm207_vm8 = vcmp.ge.f32.partialorder %v191_v11, 0.0 }
  0x72   : > { %1426 = vmatpush.bf16.msra.mxu3 %v2273_v13  ;;  %v2299_v13 = vld [vmem:[#allocation5 + $0x3c8] sm:$0xff]  ;;  %vm2164_vm11 = vmpackc.low %vm207_vm8, %vm207_vm8 }
  0x73   : > { %1388 = vmatpush.bf16.msra.mxu0 %v2248_v15  ;;  %v193_v15 = vld [vmem:[%s2614_s6 + $0x70] sm:$0xff] }
  0x74   : > { %1401 = vmatpush.bf16.msra.mxu1 %v2256_v16  ;;  %v194_v16 = vld [vmem:[%s2614_s6 + $0x78] sm:$0xff]  ;;  %vm209_vm10 = vcmp.ge.f32.partialorder %v193_v15, 0.0 }
  0x75   : > { %1414 = vmatpush.bf16.msra.mxu2 %v2264_v17  ;;  %v2274_v17 = vld [vmem:[#allocation5 + $0x300] sm:$0xff]  ;;  %vm210_vm12 = vcmp.ge.f32.partialorder %v194_v16, 0.0  ;;  %vm2168_vm14 = vmpackc.low %vm209_vm10, %vm209_vm10 }
  0x76   : > { %1427 = vmatpush.bf16.msra.mxu3 %v2272_v18  ;;  %v2282_v18 = vld [vmem:[#allocation5 + $0x340] sm:$0xff]  ;;  %vm2170_vm15 = vmpackc.low %vm210_vm12, %vm210_vm12 }
  0x77   : > { %1389 = vmatpush.bf16.msra.mxu0 %v2247_v19  ;;  %v2290_v19 = vld [vmem:[#allocation5 + $0x380] sm:$0xff] }
  0x78   : > { %1402 = vmatpush.bf16.msra.mxu1 %v2255_v20  ;;  %v2298_v20 = vld [vmem:[#allocation5 + $0x3c0] sm:$0xff] }
  0x79   : > { %1415 = vmatpush.bf16.msra.mxu2 %v2263_v21 }
  0x7a   : > { %1428 = vmatpush.bf16.msra.mxu3 %v2271_v22 }
  0x7b   : > { %1390 = vmatpush.bf16.msra.mxu0 %v2246_v23 }
  0x7c   : > { %1403 = vmatpush.bf16.msra.mxu1 %v2254_v24 }
  0x7d   : > { %1416 = vmatpush.bf16.msra.mxu2 %v2262_v25 }
  0x7e   : > { %1429 = vmatpush.bf16.msra.mxu3 %v2270_v26 }
  0x7f   : > { %1391 = vmatpush.bf16.msra.mxu0 %v2245_v27 }
  0x80   : > { %1404 = vmatpush.bf16.msra.mxu1 %v2253_v28 }
  0x81   : > { %1417 = vmatpush.bf16.msra.mxu2 %v2261_v29 }
  0x82   : > { %1430 = vmatpush.bf16.msra.mxu3 %v2269_v30 }
  0x83   : > { %1392 = vmatpush.bf16.msra.mxu0 %v2244_v31 }
  0x84   : > { %1405 = vmatpush.bf16.msra.mxu1 %v2252_v32 }
  0x85   : > { %1418 = vmatpush.bf16.msra.mxu2 %v2260_v33 }
  0x86   : > { %1431 = vmatpush.bf16.msra.mxu3 %v2268_v34 }
  0x87   : > { %1393 = vmatpush.bf16.msra.mxu0 %v2243_v35 }
  0x88   : > { %1406 = vmatpush.bf16.msra.mxu1 %v2251_v36 }
  0x89   : > { %1419 = vmatpush.bf16.msra.mxu2 %v2259_v37 }
  0x8a   : > { %1432 = vmatpush.bf16.msra.mxu3 %v2267_v38 }
  0x8b   : > { %1394 = vmatpush.bf16.msra.mxu0 %v2242_v42 }
  0x8c   : > { %1407 = vmatpush.bf16.msra.mxu1 %v2250_v43 }
  0x8d   : > { %1420 = vmatpush.bf16.msra.mxu2 %v2258_v46 }
  0x8e   : > { %1433 = vmatpush.bf16.msra.mxu3 %v2266_v47  ;;  %2157 = vmatmul.msk.bf16.vlgmr.msra.gmra.mxu0 %vm2656_vm3, %v2502_v45 }
  0x8f   : > { %1439 = vmatpush.bf16.msrb.mxu0 %v2281_v48  ;;  %2159 = vmatmul.msk.bf16.vlgmr.msra.gmra.mxu1 %vm2158_vm6, %v2502_v45 }
  0x90   : > { %1452 = vmatpush.bf16.msrb.mxu1 %v2289_v49  ;;  %2161 = vmatmul.msk.bf16.vlgmr.msra.gmra.mxu2 %vm2160_vm5, %v2502_v45 }
  0x91   : > { %1465 = vmatpush.bf16.msrb.mxu2 %v2297_v50  ;;  %2163 = vmatmul.msk.bf16.vlgmr.msra.gmra.mxu3 %vm2162_vm7, %v2502_v45 }
  0x92   : > { %1478 = vmatpush.bf16.msrb.mxu3 %v2305_v51 }
  0x93   : > { %1440 = vmatpush.bf16.msrb.mxu0 %v2280_v53 }
  0x94   : > { %1453 = vmatpush.bf16.msrb.mxu1 %v2288_v54 }
  0x95   : > { %1466 = vmatpush.bf16.msrb.mxu2 %v2296_v55 }
  0x96   : > { %1479 = vmatpush.bf16.msrb.mxu3 %v2304_v56 }
  0x97   : > { %1441 = vmatpush.bf16.msrb.mxu0 %v2279_v57 }
  0x98   : > { %1454 = vmatpush.bf16.msrb.mxu1 %v2287_v58 }
  0x99   : > { %1467 = vmatpush.bf16.msrb.mxu2 %v2295_v59 }
  0x9a   : > { %1480 = vmatpush.bf16.msrb.mxu3 %v2303_v60 }
  0x9b   : > { %1442 = vmatpush.bf16.msrb.mxu0 %v2278_v61 }
  0x9c   : > { %1455 = vmatpush.bf16.msrb.mxu1 %v2286_v62 }
  0x9d   : > { %1468 = vmatpush.bf16.msrb.mxu2 %v2294_v63 }
  0x9e   : > { %1481 = vmatpush.bf16.msrb.mxu3 %v2302_v0 }
  0x9f   : > { %1443 = vmatpush.bf16.msrb.mxu0 %v2277_v1 }
  0xa0   : > { %1456 = vmatpush.bf16.msrb.mxu1 %v2285_v2  ;;  %v2503_v2 = vmov 0.0  }
  0xa1   : > { %1469 = vmatpush.bf16.msrb.mxu2 %v2293_v3 }
  0xa2   : > { %1482 = vmatpush.bf16.msrb.mxu3 %v2301_v4 }
  0xa3   : > { %1444 = vmatpush.bf16.msrb.mxu0 %v2276_v5 }
  0xa4   : > { %1457 = vmatpush.bf16.msrb.mxu1 %v2284_v6 }
  0xa5   : > { %1470 = vmatpush.bf16.msrb.mxu2 %v2292_v7 }
  0xa6   : > { %1483 = vmatpush.bf16.msrb.mxu3 %v2300_v8 }
  0xa7   : > { %1445 = vmatpush.bf16.msrb.mxu0 %v2275_v9 }
  0xa8   : > { %1458 = vmatpush.bf16.msrb.mxu1 %v2283_v10 }
  0xa9   : > { %1471 = vmatpush.bf16.msrb.mxu2 %v2291_v12 }
  0xaa   : > { %1484 = vmatpush.bf16.msrb.mxu3 %v2299_v13 }
  0xab   : > { %1446 = vmatpush.bf16.msrb.mxu0 %v2274_v17 }
  0xac   : > { %1459 = vmatpush.bf16.msrb.mxu1 %v2282_v18 }
  0xad   : > { %1472 = vmatpush.bf16.msrb.mxu2 %v2290_v19 }
  0xae   : > { %1485 = vmatpush.bf16.msrb.mxu3 %v2298_v20  ;;  %2165 = vmatmul.msk.bf16.vlgmr.msrb.gmra.mxu0 %vm2164_vm11, %v2502_v45 }
  0xaf   : > { %2167 = vmatmul.msk.bf16.vlgmr.msrb.gmra.mxu1 %vm2166_vm13, %v2502_v45 }
  0xb0   : > { %2169 = vmatmul.msk.bf16.vlgmr.msrb.gmra.mxu2 %vm2168_vm14, %v2502_v45 }
  0xb1   : > { %2171 = vmatmul.msk.bf16.vlgmr.msrb.gmra.mxu3 %vm2170_vm15, %v2502_v45 }
  0xcb   : > { %v1292_v21 = vpop.f32.mrf.mxu0 }
  0xcc   : > { %v1305_v22 = vpop.f32.mrf.mxu1 }
  0xcd   : > { %v1306_v23 = vadd.f32 %v1305_v22, %v1292_v21 }
  0xd3   : > { %v1318_v24 = vpop.f32.mrf.mxu2  ;;  %v1294_v27 = vpop.f32.mrf.mxu0 }
  0xd4   : > { %v1319_v25 = vadd.f32 %v1318_v24, %v1306_v23  ;;  %v1331_v26 = vpop.f32.mrf.mxu3  ;;  %v1307_v29 = vpop.f32.mrf.mxu1 }
  0xd6   : > { %v1332_v28 = vadd.f32 %v1331_v26, %v1319_v25 }
  0xdb   : > { %v1320_v30 = vpop.f32.mrf.mxu2 }
  0xdc   : > { %v1333_v31 = vpop.f32.mrf.mxu3 }
  0xeb   : > { %v1344_v32 = vpop.f32.mrf.mxu0 }
  0xec   : > { %v1357_v33 = vpop.f32.mrf.mxu1  ;;  %v1345_v41 = vadd.f32 %v1344_v32, %v1332_v28 }
  0xee   : > { %v1358_v46 = vadd.f32 %v1357_v33, %v1345_v41 }
  0xf3   : > { %v1370_v34 = vpop.f32.mrf.mxu2  ;;  %v1346_v36 = vpop.f32.mrf.mxu0 }
  0xf4   : > { %v1383_v35 = vpop.f32.mrf.mxu3  ;;  %v1359_v37 = vpop.f32.mrf.mxu1  ;;  %v1371_v48 = vadd.f32 %v1370_v34, %v1358_v46 }
  0xf6   : > { %v1384_v51 = vadd.f32 %v1383_v35, %v1371_v48 }
  0xfb   : > { %v1372_v38 = vpop.f32.mrf.mxu2 }
  0xfc   : > { %v1385_v39 = vpop.f32.mrf.mxu3 }
 0x10b   : > { %v1396_v45 = vpop.f32.mrf.mxu0 }
 0x10c   : > { %v1409_v40 = vpop.f32.mrf.mxu1  ;;  %v1397_v52 = vadd.f32 %v1396_v45, %v1384_v51 }
 0x10e   : > { %v1410_v53 = vadd.f32 %v1409_v40, %v1397_v52 }
 0x113   : > { %v1422_v42 = vpop.f32.mrf.mxu2  ;;  %v1398_v44 = vpop.f32.mrf.mxu0 }
 0x114   : > { %v1435_v43 = vpop.f32.mrf.mxu3  ;;  %v1411_v47 = vpop.f32.mrf.mxu1  ;;  %v1423_v54 = vadd.f32 %v1422_v42, %v1410_v53 }
 0x116   : > { %v1436_v55 = vadd.f32 %v1435_v43, %v1423_v54 }
 0x11b   : > { %v1424_v49 = vpop.f32.mrf.mxu2 }
 0x11c   : > { %v1437_v50 = vpop.f32.mrf.mxu3 }
 0x12b   : > { %v1448_v56 = vpop.f32.mrf.mxu0 }
 0x12c   : > { %v1461_v57 = vpop.f32.mrf.mxu1  ;;  %v1449_v58 = vadd.f32 %v1448_v56, %v1436_v55 }
 0x12e   : > { %v1462_v59 = vadd.f32 %v1461_v57, %v1449_v58 }
 0x133   : > { %v1474_v60 = vpop.f32.mrf.mxu2  ;;  %v1450_v63 = vpop.f32.mrf.mxu0 }
 0x134   : > { %v1487_v61 = vpop.f32.mrf.mxu3  ;;  %v1475_v62 = vadd.f32 %v1474_v60, %v1462_v59  ;;  %v1463_v0 = vpop.f32.mrf.mxu1 }
 0x136   : > { %v1488_v1 = vadd.f32 %v1487_v61, %v1475_v62 }
 0x138   : > { %vm1491_vm0 = vcmp.ge.f32.partialorder %v1488_v1, 32768.0 }
 0x139   : > { %v1492_v3 = vsel %vm1491_vm0, 32768.0, %v2503_v2  ;;  %v1502_v13 = vsel %vm1491_vm0, 15.0, %v2503_v2 }
 0x13a   : > { %v1493_v4 = vsub.f32 %v1488_v1, %v1492_v3 }
 0x13b   : > { %v1476_v5 = vpop.f32.mrf.mxu2 }
 0x13c   : > { %v1489_v6 = vpop.f32.mrf.mxu3  ;;  %v1496_v7 = vshra.s32 %v1493_v4, 23  ;;  %vm1494_vm1 = vcmp.gt.f32.partialorder %v1493_v4, 0.0 }
 0x13e   : > { %v2172_v8 = vadd.s32 4294967169, %v1496_v7 }
 0x140   : > { %v1498_v9 = vcvt.s32.f32 %v2172_v8 }
 0x142   : > { %v1499_v10 = vsub.f32 14.0, %v1498_v9 }
 0x144   : > { %v1500_v11 = vsel %vm1491_vm0, %v1499_v10, %v1498_v9 }
 0x145   : > { %v1501_v12 = vsel %vm1494_vm1, %v1500_v11, 0.0 }
 0x146   : > { %v1503_v14 = vadd.f32 %v1502_v13, %v1501_v12 }
 0x148   : > { %1504 = vst [vmem:[%s178_s14] sm:$0xff] %v1503_v14 }
 0x149   : > { %2454 = shalt.err (!%p2451_p9)
}
 0x14a   : > { %2312 = dma.vmem_to_hbm [thread:$0]  (%p2579_p13), %s1519_s15, 128, %s1521_s18, %s1506_s16  }
 0x14b PF: > { %s1532_s29 = sand.u32 1, %s2485_s9   ;;  %p2725_p10 = scmp.ge.s32.totalorder %s2497_s12, 2 }
 0x14c   : > { %s1533_s4 = scalar_lea.sflag [#allocation4], %s1532_s29 }
 0x14d   : > { %p2323_p11 = pnand %p2725_p10, %p2584_p4 }
 0x14f   : > { %p2324_p0 = pneg %p2323_p11 }
 0x151   : > { %2480 = dma.done.wait (%p2324_p0), %s1533_s4, 128  }
 0x152   : > { %2482 = vsyncadd (%p2324_p0), %s1533_s4, 4294967168  ;;  %p16_p2 = scmp.ge.s32.totalorder %s2559_s23, 4   ;;  %s2726_s9 = smov %s2489_s10 }
 0x153   : > { %s2727_s10 = smov %s2493_s11  ;;  %s2728_s11 = smov %s2571_s26 }
 0x154   : > { %s2729_s12 = smov %s2559_s23  ;;  %18 = sbr.rel (!%p16_p2) target bundleno = 6 (0x6), region = 77 }
 0x159   :  { %1539 = vsyncpa [#allocation3], 1 }
 0x15a   :  { %1541 = vsyncpa [#allocation3 + $0x1], 1 }
 0x15b   :  { %1542 = vsyncpa [#allocation6], 1 }
 0x15c   :  { %1543 = vsyncpa [#allocation4], 1 }
 0x15d   :  { %1545 = vsyncpa [#allocation4 + $0x1], 1 }

</bundles_post_ra>
